<compile_context>
chip_gen: v7x
topology: tpu7x:2x2x1
jax: 0.10.0
libtpu: 0.0.40
codegen_flags: <defaults>
</compile_context>

<pallas_src>
from functools import partial

import jax
import jax.numpy as jnp
from jax.experimental import pallas as pl
from jax.experimental.pallas import tpu as pltpu

D_PAD = 128   # padded contraction / feature width (one full lane dim)
H_PAD = 128   # padded fused hidden width (teacher 64 | student 16 | pad | 1-bias)
C_PAD = 128   # padded fused output width (teacher 16 | student 16 | pad)
SUBLANE = 8   # f32 sublane count


def _fused_distill_kernel(x_ref, w1_ref, w2_ref, o_ref):
    """Fused teacher+student forward: relu(x @ W1f) @ W2f.

    Biases are pre-folded into W1f/W2f via a constant-1 column in x (and the
    resulting constant-1 hidden unit), so the kernel is just 2 MXU passes and
    one VPU max.
    """
    h = jnp.dot(x_ref[...], w1_ref[...], preferred_element_type=jnp.float32)
    h = jnp.maximum(h, 0.0)                                   # ReLU on VPU
    y = jnp.dot(h, w2_ref[...], preferred_element_type=jnp.float32)
    o_ref[...] = y.astype(o_ref.dtype)


def _fused_distill_pallas(x_pad, w1f, w2f):
    """Single pallas_call over lane/sublane-dense padded operands -> (B_pad, C_PAD)."""
    b_pad = x_pad.shape[0]
    flops = 2 * b_pad * D_PAD * H_PAD + 2 * b_pad * H_PAD * C_PAD
    bytes_accessed = 4 * (x_pad.size + w1f.size + w2f.size + b_pad * C_PAD)
    return pl.pallas_call(
        _fused_distill_kernel,
        out_shape=jax.ShapeDtypeStruct((b_pad, C_PAD), jnp.float32),
        in_specs=[
            pl.BlockSpec(memory_space=pltpu.MemorySpace.VMEM),
            pl.BlockSpec(memory_space=pltpu.MemorySpace.VMEM),
            pl.BlockSpec(memory_space=pltpu.MemorySpace.VMEM),
        ],
        out_specs=pl.BlockSpec(memory_space=pltpu.MemorySpace.VMEM),
        cost_estimate=pl.CostEstimate(
            flops=flops, transcendentals=0, bytes_accessed=bytes_accessed),
    )(x_pad, w1f, w2f)


@partial(jax.jit, static_argnames=("d_in", "c_t", "c_s"))
def _distill_forward(inputs, w1f, w2f, *, d_in, c_t, c_s):
    """Pad input (lanes + bias column + sublane batch), run kernel, slice outputs."""
    b = inputs.shape[0]
    b_pad = ((b + SUBLANE - 1) // SUBLANE) * SUBLANE

    x_pad = jnp.zeros((b_pad, D_PAD), jnp.float32)
    x_pad = x_pad.at[:b, :d_in].set(inputs.astype(jnp.float32))
    x_pad = x_pad.at[:, D_PAD - 1].set(1.0)   # bias lane (constant 1)

    out = _fused_distill_pallas(x_pad, w1f, w2f)   # (b_pad, C_PAD)
    teacher_out = out[:b, :c_t]
    student_out = out[:b, c_t:c_t + c_s]
    return teacher_out, student_out


class DistillationModelPallas:
    """JAX/Pallas equivalent of the PyTorch DistillationModel wrapper.

    Teacher and student sub-models are fused into one padded weight pair at
    construction time; forward() launches a single Pallas kernel and splits
    the lane-dense output back into (teacher_out, student_out).
    """

    def __init__(self, teacher_params, student_params):
        tw1, tb1, tw2, tb2 = teacher_params
        sw1, sb1, sw2, sb2 = student_params

        self.d_in = tw1.shape[0]
        self.h_t = tw1.shape[1]
        self.h_s = sw1.shape[1]
        self.c_t = tw2.shape[1]
        self.c_s = sw2.shape[1]
        assert self.d_in == sw1.shape[0]
        assert self.d_in < D_PAD and self.h_t + self.h_s < H_PAD
        assert self.c_t + self.c_s <= C_PAD

        # ---- Fused, padded layer-1 weights (concat along output dim) -------
        # rows 0:d_in carry the real weights; row D_PAD-1 carries the biases
        # (paired with the constant-1 column appended to x).
        w1f = jnp.zeros((D_PAD, H_PAD), jnp.float32)
        w1f = w1f.at[: self.d_in, : self.h_t].set(tw1)
        w1f = w1f.at[: self.d_in, self.h_t: self.h_t + self.h_s].set(sw1)
        w1f = w1f.at[D_PAD - 1, : self.h_t].set(tb1[0])
        w1f = w1f.at[D_PAD - 1, self.h_t: self.h_t + self.h_s].set(sb1[0])
        # Make hidden column H_PAD-1 a constant 1.0 (x[:, -1] == 1) so layer-2
        # biases can also be folded into the weights; ReLU(1) == 1.
        w1f = w1f.at[D_PAD - 1, H_PAD - 1].set(1.0)
        self.w1f = w1f

        # ---- Fused, padded layer-2 weights (block-diagonal) -----------------
        w2f = jnp.zeros((H_PAD, C_PAD), jnp.float32)
        w2f = w2f.at[: self.h_t, : self.c_t].set(tw2)
        w2f = w2f.at[self.h_t: self.h_t + self.h_s,
                     self.c_t: self.c_t + self.c_s].set(sw2)
        w2f = w2f.at[H_PAD - 1, : self.c_t].set(tb2[0])
        w2f = w2f.at[H_PAD - 1, self.c_t: self.c_t + self.c_s].set(sb2[0])
        self.w2f = w2f

    def __call__(self, inputs):
        return _distill_forward(
            inputs, self.w1f, self.w2f,
            d_in=self.d_in, c_t=self.c_t, c_s=self.c_s)


def _init_linear(key, d_in, d_out):
    """Deterministic nn.Linear-style init (uniform in +/- 1/sqrt(d_in))."""
    kw, kb = jax.random.split(key)
    bound = 1.0 / jnp.sqrt(jnp.float32(d_in))
    w = jax.random.uniform(kw, (d_in, d_out), jnp.float32, -bound, bound)
    b = jax.random.uniform(kb, (1, d_out), jnp.float32, -bound, bound)
    return w, b


if __name__ == "__main__":
    key = jax.random.PRNGKey(0)
    k_x, k_t1, k_t2, k_s1, k_s2 = jax.random.split(key, 5)

    B, D_IN, H_T, H_S, C = 8, 32, 64, 16, 16

    # Deterministic synthetic parameters (no checkpoint loading).
    tw1, tb1 = _init_linear(k_t1, D_IN, H_T)
    tw2, tb2 = _init_linear(k_t2, H_T, C)
    sw1, sb1 = _init_linear(k_s1, D_IN, H_S)
    sw2, sb2 = _init_linear(k_s2, H_S, C)

    model = DistillationModelPallas(
        teacher_params=(tw1, tb1, tw2, tb2),
        student_params=(sw1, sb1, sw2, sb2),
    )

    x = jax.random.normal(k_x, (B, D_IN), jnp.float32)

    teacher_out, student_out = model(x)
    jax.block_until_ready((teacher_out, student_out))

    # Sanity check against plain-JAX reference of the same sub-models.
    def ref_mlp(x, w1, b1, w2, b2):
        return jnp.maximum(x @ w1 + b1, 0.0) @ w2 + b2

    t_ref = ref_mlp(x, tw1, tb1, tw2, tb2)
    s_ref = ref_mlp(x, sw1, sb1, sw2, sb2)
    assert teacher_out.shape == (B, C) and student_out.shape == (B, C)
    assert jnp.allclose(teacher_out, t_ref, atol=1e-5, rtol=1e-5)
    assert jnp.allclose(student_out, s_ref, atol=1e-5, rtol=1e-5)

    print("KERNEL_OK")
</pallas_src>

<mosaic_0001>
module attributes {stable_mosaic.version = 11 : i64} {
  func.func @_fused_distill_kernel(%arg0: memref<8x128xf32, #tpu.memory_space<vmem>>, %arg1: memref<128x128xf32, #tpu.memory_space<vmem>>, %arg2: memref<128x128xf32, #tpu.memory_space<vmem>>, %arg3: memref<8x128xf32, #tpu.memory_space<vmem>>) attributes {dimension_semantics = [], scalar_prefetch = 0 : i64, scratch_operands = 0 : i64, tpu.core_type = #tpu.core_type<tc>} {
    %c0 = arith.constant 0 : index
    %c0_0 = arith.constant 0 : index
    %0 = vector.load %arg0[%c0, %c0_0] : memref<8x128xf32, #tpu.memory_space<vmem>>, vector<8x128xf32>
    %c0_1 = arith.constant 0 : index
    %c0_2 = arith.constant 0 : index
    %1 = vector.load %arg1[%c0_1, %c0_2] : memref<128x128xf32, #tpu.memory_space<vmem>>, vector<128x128xf32>
    %cst = arith.constant dense<0.000000e+00> : vector<8x128xf32>
    %2 = tpu.matmul %0, %1, %cst {dimension_numbers = #tpu.dot_dimension_numbers<[1], [0], [0], [1], [0, 0, 1, 1], [], []>} : vector<8x128xf32>, vector<128x128xf32>, vector<8x128xf32> -> vector<8x128xf32>
    %cst_3 = arith.constant 0.000000e+00 : f32
    %3 = vector.broadcast %cst_3 : f32 to vector<8x128xf32>
    %4 = arith.maximumf %2, %3 : vector<8x128xf32>
    %c0_4 = arith.constant 0 : index
    %c0_5 = arith.constant 0 : index
    %5 = vector.load %arg2[%c0_4, %c0_5] : memref<128x128xf32, #tpu.memory_space<vmem>>, vector<128x128xf32>
    %cst_6 = arith.constant dense<0.000000e+00> : vector<8x128xf32>
    %6 = tpu.matmul %4, %5, %cst_6 {dimension_numbers = #tpu.dot_dimension_numbers<[1], [0], [0], [1], [0, 0, 1, 1], [], []>} : vector<8x128xf32>, vector<128x128xf32>, vector<8x128xf32> -> vector<8x128xf32>
    %c0_7 = arith.constant 0 : index
    %c0_8 = arith.constant 0 : index
    %7 = vector.load %arg3[%c0_7, %c0_8] : memref<8x128xf32, #tpu.memory_space<vmem>>, vector<8x128xf32>
    tpu.vector_store %arg3[%c0_7, %c0_8], %6 {strides = array<i32>} : memref<8x128xf32, #tpu.memory_space<vmem>>, vector<8x128xf32>,
    return
  }
}

</mosaic_0001>

<bundles_post_ra>
// kernel: _distill_forward.1
= control target key start
LH: loop header
LB: loop body
LE: loop exit
PB: predicated region body
PF: predicated region fallthrough
CT: control target
= control target key end

     0   :  { %8 = vsyncpa [#allocation3], 0  ;;  %s503_s0 = inlined_call_operand.vmem [shape: f32[8,128], index: 0, kind: input, shape index: {}]   ;;  %s504_s1 = inlined_call_operand.hbm [shape: f32[128,128], index: 1, kind: input, shape index: {}]   ;;  %s505_s2 = inlined_call_operand.hbm [shape: f32[128,128], index: 2, kind: input, shape index: {}]   ;;  %s506_s3 = inlined_call_operand.vmem [shape: f32[8,128], index: 3, kind: output, shape index: {}]  }
   0x1   :  { %9 = vsyncpa [#allocation5], 0  ;;  %s430_s12 = smov [#allocation2]   ;;  %s382_s16 = scalar_lea.hbm %s504_s1, 2048 }
   0x2   :  { %s17_s13 = sshll.u32 %s430_s12, 4  ;;  %p383_p0 = scmp.ne.s32.totalorder %s504_s1, %s382_s16  ;;  %s18_s13 = int_to_ptr.vmem [resolvable:$true] %s17_s13 }
   0x3   :  { %p386_p1 = scmp.lt.u32.totalorder %s382_s16, %s504_s1 }
   0x5   :  { %p388_p2 = pnand %p386_p1, %p383_p0 }
   0x7   :  { %391 = shalt.err (!%p388_p2)
}
   0x8   :  { %s392_s21 = scalar_lea.vmem %s18_s13, 2048  ;;  %p397_p4 = scmp.lt.s32.totalorder %s18_s13, %s18_s13 }
   0x9   :  { %p393_p3 = scmp.ne.s32.totalorder %s18_s13, %s392_s21  ;;  %p398_p5 = scmp.lt.s32.totalorder %s392_s21, %s392_s21 }
   0xb   :  { %p399_p6 = por %p398_p5, %p397_p4 }
   0xd   :  { %p400_p7 = pnand %p399_p6, %p393_p3 }
   0xf   :  { %403 = shalt.err (!%p400_p7)
}
  0x10   :  { %s431_s22 = smov 128   ;;  %s432_s23 = smov 8  }
  0x11   :  { %23 = dma.hbm_to_vmem [thread:$0]  %s504_s1, 2048, %s18_s13, [#allocation3], %s431_s22, %s431_s22, %s432_s23  }
  0x12   :  { %s433_s26 = smov [#allocation4]   ;;  %s404_s30 = scalar_lea.hbm %s505_s2, 2048 }
  0x13   :  { %s29_s27 = sshll.u32 %s433_s26, 4  ;;  %p405_p8 = scmp.ne.s32.totalorder %s505_s2, %s404_s30  ;;  %s30_s27 = int_to_ptr.vmem [resolvable:$true] %s29_s27 }
  0x14   :  { %p408_p9 = scmp.lt.u32.totalorder %s404_s30, %s505_s2 }
  0x16   :  { %p410_p10 = pnand %p408_p9, %p405_p8 }
  0x18   :  { %413 = shalt.err (!%p410_p10)
}
  0x19   :  { %s414_s8 = scalar_lea.vmem %s30_s27, 2048  ;;  %p419_p12 = scmp.lt.s32.totalorder %s30_s27, %s30_s27 }
  0x1a   :  { %p415_p11 = scmp.ne.s32.totalorder %s30_s27, %s414_s8  ;;  %p420_p13 = scmp.lt.s32.totalorder %s414_s8, %s414_s8 }
  0x1c   :  { %p421_p0 = por %p420_p13, %p419_p12 }
  0x1e   :  { %p422_p1 = pnand %p421_p0, %p415_p11 }
  0x20   :  { %425 = shalt.err (!%p422_p1)
}
  0x21   :  { %35 = dma.hbm_to_vmem [thread:$0]  %s505_s2, 2048, %s30_s27, [#allocation5], %s431_s22, %s431_s22, %s432_s23  }
  0x22   :  { %426 = dma.done.wait [#allocation3], 2048  }
  0x23   :  { %427 = vsyncadd [#allocation3], 4294965248 }
  0x24   :  { %428 = dma.done.wait [#allocation5], 2048  }
  0x25   :  { %429 = vsyncadd [#allocation5], 4294965248  ;;  %v434_v0 = vmov 0.0|0.0   ;;  %vm435_vm0 = vmmov 0   ;;  %v436_v1 = vmov 0.0   ;;  %v43_v2 = vld [vmem:[#allocation2] sm:$0xff] }
  0x26   :  { %327 = vmatprep.subr.bf16.mxu0 %v434_v0  ;;  %289 = vmatprep.mubr.msk.f32.mxu0 %vm435_vm0, %v436_v1  ;;  %v44_v3 = vld [vmem:[#allocation2 + $0x8] sm:$0xff]  ;;  %v45_v4 = vld [vmem:[#allocation2 + $0x10] sm:$0xff]  ;;  %v46_v6 = vld [vmem:[#allocation2 + $0x18] sm:$0xff] }
  0x27   :  { %351 = vmatprep.subr.bf16.mxu1 %v434_v0  ;;  %324 = vmatprep.mubr.msk.f32.mxu1 %vm435_vm0, %v436_v1  ;;  %v328_v5 = vpack.c.bf16 %v44_v3, %v43_v2  ;;  %v331_v7 = vpack.c.bf16 %v46_v6, %v45_v4  ;;  %v47_v8 = vld [vmem:[#allocation2 + $0x20] sm:$0xff]  ;;  %v48_v9 = vld [vmem:[#allocation2 + $0x28] sm:$0xff]  ;;  %v132_v12 = vld [vmem:[#allocation4 + $0x10] sm:$0xff] }
  0x28   :  { %v130_v10 = vld [vmem:[#allocation4] sm:$0xff]  ;;  %v131_v11 = vld [vmem:[#allocation4 + $0x8] sm:$0xff]  ;;  %v133_v13 = vld [vmem:[#allocation4 + $0x18] sm:$0xff]  ;;  %v334_v14 = vpack.c.bf16 %v48_v9, %v47_v8 }
  0x29   :  { %329 = vmatpush3.bf16.msra.mxu0 %v328_v5  ;;  %v352_v15 = vpack.c.bf16 %v131_v11, %v130_v10  ;;  %v49_v16 = vld [vmem:[#allocation2 + $0x30] sm:$0xff]  ;;  %v50_v17 = vld [vmem:[#allocation2 + $0x38] sm:$0xff]  ;;  %v355_v18 = vpack.c.bf16 %v133_v13, %v132_v12  ;;  %v134_v19 = vld [vmem:[#allocation4 + $0x20] sm:$0xff] }
  0x2a   :  { %330 = vmatprep.subr.bf16.mxu0 %v434_v0  ;;  %v135_v20 = vld [vmem:[#allocation4 + $0x28] sm:$0xff]  ;;  %v337_v21 = vpack.c.bf16 %v50_v17, %v49_v16  ;;  %v51_v22 = vld [vmem:[#allocation2 + $0x40] sm:$0xff]  ;;  %v136_v25 = vld [vmem:[#allocation4 + $0x30] sm:$0xff] }
  0x2b   :  { %353 = vmatpush3.bf16.msra.mxu1 %v352_v15  ;;  %v52_v23 = vld [vmem:[#allocation2 + $0x48] sm:$0xff]  ;;  %v358_v24 = vpack.c.bf16 %v135_v20, %v134_v19  ;;  %v137_v26 = vld [vmem:[#allocation4 + $0x38] sm:$0xff]  ;;  %v53_v28 = vld [vmem:[#allocation2 + $0x50] sm:$0xff] }
  0x2c   :  { %354 = vmatprep.subr.bf16.mxu1 %v434_v0  ;;  %v340_v27 = vpack.c.bf16 %v52_v23, %v51_v22  ;;  %v54_v29 = vld [vmem:[#allocation2 + $0x58] sm:$0xff]  ;;  %v361_v30 = vpack.c.bf16 %v137_v26, %v136_v25  ;;  %v138_v31 = vld [vmem:[#allocation4 + $0x40] sm:$0xff]  ;;  %v139_v32 = vld [vmem:[#allocation4 + $0x48] sm:$0xff] }
  0x2d   :  { %332 = vmatpush3.bf16.msra.mxu0 %v331_v7  ;;  %v343_v33 = vpack.c.bf16 %v54_v29, %v53_v28  ;;  %v55_v34 = vld [vmem:[#allocation2 + $0x60] sm:$0xff]  ;;  %v56_v35 = vld [vmem:[#allocation2 + $0x68] sm:$0xff]  ;;  %v364_v36 = vpack.c.bf16 %v139_v32, %v138_v31  ;;  %v140_v37 = vld [vmem:[#allocation4 + $0x50] sm:$0xff] }
  0x2e   :  { %333 = vmatprep.subr.bf16.mxu0 %v434_v0  ;;  %v141_v38 = vld [vmem:[#allocation4 + $0x58] sm:$0xff]  ;;  %v346_v39 = vpack.c.bf16 %v56_v35, %v55_v34  ;;  %v57_v40 = vld [vmem:[#allocation2 + $0x70] sm:$0xff]  ;;  %v142_v43 = vld [vmem:[#allocation4 + $0x60] sm:$0xff] }
  0x2f   :  { %356 = vmatpush3.bf16.msra.mxu1 %v355_v18  ;;  %v58_v41 = vld [vmem:[#allocation2 + $0x78] sm:$0xff]  ;;  %v367_v42 = vpack.c.bf16 %v141_v38, %v140_v37  ;;  %v143_v44 = vld [vmem:[#allocation4 + $0x68] sm:$0xff]  ;;  %v42_v47 = vld [vmem:[%s503_s0] sm:$0xff] }
  0x30   :  { %357 = vmatprep.subr.bf16.mxu1 %v434_v0  ;;  %v349_v45 = vpack.c.bf16 %v58_v41, %v57_v40  ;;  %v370_v46 = vpack.c.bf16 %v143_v44, %v142_v43  ;;  %v144_v48 = vld [vmem:[#allocation4 + $0x70] sm:$0xff]  ;;  %v145_v49 = vld [vmem:[#allocation4 + $0x78] sm:$0xff] }
  0x31   :  { %335 = vmatpush3.bf16.msra.mxu0 %v334_v14  ;;  %v373_v50 = vpack.c.bf16 %v145_v49, %v144_v48 }
  0x32   :  { %336 = vmatprep.subr.bf16.mxu0 %v434_v0 }
  0x33   :  { %359 = vmatpush3.bf16.msra.mxu1 %v358_v24 }
  0x34   :  { %360 = vmatprep.subr.bf16.mxu1 %v434_v0 }
  0x35   :  { %338 = vmatpush3.bf16.msra.mxu0 %v337_v21 }
  0x36   :  { %339 = vmatprep.subr.bf16.mxu0 %v434_v0 }
  0x37   :  { %362 = vmatpush3.bf16.msra.mxu1 %v361_v30 }
  0x38   :  { %363 = vmatprep.subr.bf16.mxu1 %v434_v0 }
  0x39   :  { %341 = vmatpush3.bf16.msra.mxu0 %v340_v27 }
  0x3a   :  { %342 = vmatprep.subr.bf16.mxu0 %v434_v0 }
  0x3b   :  { %365 = vmatpush3.bf16.msra.mxu1 %v364_v36 }
  0x3c   :  { %366 = vmatprep.subr.bf16.mxu1 %v434_v0 }
  0x3d   :  { %344 = vmatpush3.bf16.msra.mxu0 %v343_v33 }
  0x3e   :  { %345 = vmatprep.subr.bf16.mxu0 %v434_v0 }
  0x3f   :  { %368 = vmatpush3.bf16.msra.mxu1 %v367_v42 }
  0x40   :  { %369 = vmatprep.subr.bf16.mxu1 %v434_v0 }
  0x41   :  { %347 = vmatpush3.bf16.msra.mxu0 %v346_v39 }
  0x42   :  { %348 = vmatprep.subr.bf16.mxu0 %v434_v0 }
  0x43   :  { %371 = vmatpush3.bf16.msra.mxu1 %v370_v46 }
  0x44   :  { %372 = vmatprep.subr.bf16.mxu1 %v434_v0 }
  0x45   :  { %350 = vmatpush3.bf16.msra.mxu0 %v349_v45 }
  0x47   :  { %374 = vmatpush3.bf16.msra.mxu1 %v373_v50 }
  0x48   :  { %290 = vmatmul.mubr.f32.vlgmr.msra.gmra.mrb[0].mxu0 %v42_v47 }
 0x11b   :  { %v125_v51 = vpop.f32.mrb[0].mxu0 }
 0x11c   :  { %v129_v52 = vmax.f32 %v125_v51, 0.0  ;;  %v291_v53 = vpop.f32.mrb[1].mxu0 }
 0x11e   :  { %325 = vmatmul.mubr.f32.vlgmr.msra.gmra.mrb[0].mxu1 %v129_v52 }
 0x1f1   :  { %v212_v54 = vpop.f32.mrb[0].mxu1 }
 0x1f2   :  { %216 = vst [vmem:[%s506_s3] sm:$0xff] %v212_v54  ;;  %v326_v55 = vpop.f32.mrb[1].mxu1 }
 0x1f3   :  { %221 = vsyncpa [#allocation3], 1 }
 0x1f4   :  { %222 = vsyncpa [#allocation5], 1 }

</bundles_post_ra>
